<compile_context>
chip_gen: v5e
topology: v5e:2x2
jax: 0.10.0
libtpu: 0.0.40
codegen_flags: <defaults>
</compile_context>

<pallas_src>
import functools

import jax
import jax.numpy as jnp
from jax import lax
from jax.experimental import pallas as pl
from jax.experimental.pallas import tpu as pltpu

BN_EPS = 1e-5
LANE = 128


def _round_up(a, b):
  return ((a + b - 1) // b) * b


def _vmem_capacity_bytes(default=64 * 1024 * 1024):
  """Physical per-core VMEM (v5e/v6e: 128 MiB, v7x: 64 MiB); safe default."""
  try:
    info = pltpu.get_tpu_info()
    cap = getattr(info, "vmem_capacity_bytes", None)
    if cap:
      return int(cap)
  except Exception:
    pass
  return default


def _mlp_block_kernel(xcat_ref, w1_ref, b1_ref, wdn_ref, o_ref, *, c_pad):
  """Fused spatial-mix + MLP(up, BN, ReLU, down) + residual for one token tile.

  xcat_ref: (TM, Cin_pad) f32, cols = [x (C) | x[l-1,:Cp] | x[l+1,:Cp] | 0-pad]
  w1_ref  : (Cin_pad, H_pad) bf16 = Wsm @ (Wup * bn_scale)   (fused weights)
  b1_ref  : (1, H_pad) f32       folded BatchNorm bias
  wdn_ref : (H_pad, C_pad) bf16  1x1 down-projection (layer_scale folded)
  o_ref   : (TM, C_pad)
  """
  xcat = xcat_ref[...]
  shortcut = xcat[:, :c_pad]                  # f32 residual (lane-aligned slice)

  # bf16 MXU matmuls, f32 accumulation.
  h = jnp.dot(xcat.astype(jnp.bfloat16), w1_ref[...],
              preferred_element_type=jnp.float32)
  h = jnp.maximum(h + b1_ref[...], 0.0)
  y = jnp.dot(h.astype(jnp.bfloat16), wdn_ref[...],
              preferred_element_type=jnp.float32)

  o_ref[...] = (shortcut + y).astype(o_ref.dtype)


def prepare_mlp_block_weights(pconv_w, up_w, bn_gamma, bn_beta, bn_mean, bn_var,
                              down_w, *, dim, n_div, layer_scale=None):
  """One-time weight fusion. Run once at model load, NOT inside the per-call jit.

  Returns (w1, b1, wdn):
    w1  (Cin_pad, H_pad) bf16 : spatial-mixing matrix @ (BN-folded up-proj)
    b1  (1, H_pad)       f32  : folded BatchNorm bias
    wdn (H_pad, C_pad)   bf16 : down-proj (with optional layer_scale folded in)
  """
  C = dim
  Cp = C // n_div
  H = up_w.shape[0]
  C_pad = _round_up(C, LANE)
  H_pad = _round_up(H, LANE)
  Cin = C + 2 * Cp                        # tight packing: [x | x_prev | x_next]
  Cin_pad = _round_up(Cin, LANE)

  # Fold eval-mode BatchNorm1d into the up-projection.
  inv_std = lax.rsqrt(bn_var + BN_EPS)
  scale = bn_gamma * inv_std                                  # (H,)
  shift = bn_beta - bn_mean * scale                           # (H,)
  wup = up_w[:, :, 0].T * scale[None, :]                      # (C, H)

  # Spatial-mixing matrix in the tight xcat layout (rows index xcat columns).
  wsm = jnp.zeros((Cin, C), jnp.float32)
  wsm = wsm.at[:Cp, :Cp].set(pconv_w[:, :, 1].T)              # center tap x[l]
  wsm = wsm.at[Cp:C, Cp:C].set(jnp.eye(C - Cp, dtype=jnp.float32))  # untouched
  wsm = wsm.at[C:C + Cp, :Cp].set(pconv_w[:, :, 0].T)         # left  tap x[l-1]
  wsm = wsm.at[C + Cp:Cin, :Cp].set(pconv_w[:, :, 2].T)       # right tap x[l+1]

  # Fuse spatial mixing into the up-projection -> one MXU pass saved per tile.
  w1 = wsm @ wup                                              # (Cin, H)
  w1 = jnp.pad(w1, ((0, Cin_pad - Cin), (0, H_pad - H))).astype(jnp.bfloat16)
  b1 = jnp.pad(shift, (0, H_pad - H)).reshape(1, H_pad).astype(jnp.float32)

  wdn = down_w[:, :, 0].T                                     # (H, C)
  if layer_scale is not None:
    wdn = wdn * layer_scale[None, :]
  wdn = jnp.pad(wdn, ((0, H_pad - H), (0, C_pad - C))).astype(jnp.bfloat16)
  return w1, b1, wdn


def mlp_block_forward(x, w1, b1, wdn, *, n_div, tm=None):
  """x: (N, C, L) f32 -> (N, C, L) (FasterNet MLPBlock forward, eval mode)."""
  N, C, L = x.shape
  Cp = C // n_div
  Cin_pad, H_pad = w1.shape
  C_pad = wdn.shape[1]
  Cin = C + 2 * Cp

  # Token-major layout + conv halo columns (pad+slice only, no gather).
  # TODO(synk): when stacking blocks, keep activations token-major across the
  # stack and build the +/-1 halo in-kernel (sublane shifts / halo DMA) to kill
  # the per-block transpose + xcat materialization.
  x_cl = jnp.transpose(x, (0, 2, 1))                          # (N, L, C)
  xp = x_cl[:, :, :Cp]                                        # (N, L, Cp)
  x_prev = jnp.pad(xp[:, :-1, :], ((0, 0), (1, 0), (0, 0)))   # x[l-1], 0 @ l=0
  x_next = jnp.pad(xp[:, 1:, :], ((0, 0), (0, 1), (0, 0)))    # x[l+1], 0 @ L-1
  xcat = jnp.concatenate([x_cl, x_prev, x_next], axis=-1)     # (N, L, Cin)
  xcat = jnp.pad(xcat, ((0, 0), (0, 0), (0, Cin_pad - Cin)))

  M = N * L
  xcat = xcat.reshape(M, Cin_pad)

  # Per-generation token-tile / VMEM policy.
  vmem_cap = _vmem_capacity_bytes()
  if tm is None:
    tm = 512 if vmem_cap >= (100 << 20) else 256   # v5e/v6e: 128 MiB, v7x: 64 MiB
  TM = min(tm, _round_up(M, 8))

  def _vmem_est(t):
    io = 4 * 2 * t * (Cin_pad + C_pad)                   # double-buffered f32 IO
    wts = 2 * (Cin_pad * H_pad + H_pad * C_pad) + 4 * H_pad  # single-buffered wts
    act = 8 * t * H_pad                                  # h intermediate + slack
    return io + wts + act

  budget = int(0.75 * vmem_cap)                          # compiler headroom
  while TM > 64 and _vmem_est(TM) > budget:
    TM //= 2
  TM = max(8, _round_up(TM, 8))
  vmem_bytes = int(min(budget, max(32 << 20, 2 * _vmem_est(TM))))

  M_pad = _round_up(M, TM)
  if M_pad != M:
    xcat = jnp.pad(xcat, ((0, M_pad - M), (0, 0)))

  def _const_spec(shape):
    idx = lambda i: (0,) * len(shape)
    try:                                                 # single-buffer constants
      return pl.BlockSpec(shape, idx, pipeline_mode=pl.Buffered(1))
    except Exception:
      return pl.BlockSpec(shape, idx)

  kernel = functools.partial(_mlp_block_kernel, c_pad=C_pad)
  out = pl.pallas_call(
      kernel,
      out_shape=jax.ShapeDtypeStruct((M_pad, C_pad), x.dtype),
      grid_spec=pltpu.PrefetchScalarGridSpec(
          num_scalar_prefetch=0,
          grid=(M_pad // TM,),
          in_specs=[
              pl.BlockSpec((TM, Cin_pad), lambda i: (i, 0)),
              _const_spec((Cin_pad, H_pad)),
              _const_spec((1, H_pad)),
              _const_spec((H_pad, C_pad)),
          ],
          out_specs=pl.BlockSpec((TM, C_pad), lambda i: (i, 0)),
      ),
      compiler_params=pltpu.CompilerParams(
          dimension_semantics=("parallel",),
          vmem_limit_bytes=vmem_bytes),
  )(xcat, w1, b1, wdn)

  out = out[:M, :C].reshape(N, L, C)
  return jnp.transpose(out, (0, 2, 1))                        # back to (N, C, L)


def _reference_forward(x, pconv_w, up_w, bn_gamma, bn_beta, bn_mean, bn_var,
                       down_w, *, n_div, layer_scale=None):
  """Pure-JAX reference: Partial_conv3 (split_cat) + 1x1 MLP + BN + ReLU + res."""
  N, C, L = x.shape
  Cp = C // n_div
  prec = lax.Precision.HIGHEST
  x1 = lax.conv_general_dilated(
      x[:, :Cp, :], pconv_w, (1,), [(1, 1)],
      dimension_numbers=("NCH", "OIH", "NCH"), precision=prec)
  sm = jnp.concatenate([x1, x[:, Cp:, :]], axis=1)
  h = lax.conv_general_dilated(
      sm, up_w, (1,), "VALID",
      dimension_numbers=("NCH", "OIH", "NCH"), precision=prec)
  inv_std = lax.rsqrt(bn_var + BN_EPS)
  h = ((h - bn_mean[None, :, None]) * inv_std[None, :, None]
       * bn_gamma[None, :, None] + bn_beta[None, :, None])
  h = jnp.maximum(h, 0.0)
  y = lax.conv_general_dilated(
      h, down_w, (1,), "VALID",
      dimension_numbers=("NCH", "OIH", "NCH"), precision=prec)
  if layer_scale is not None:
    y = y * layer_scale[None, :, None]
  return x + y


if __name__ == "__main__":
  # Small shapes consistent with the module: x is (N, dim, L) for Conv1d.
  N, dim, L = 2, 8, 16
  n_div = 4
  mlp_ratio = 2.0
  hidden = int(dim * mlp_ratio)
  Cp = dim // n_div

  key = jax.random.PRNGKey(0)
  kx, kp, ku, kd, kg, kb, km, kv = jax.random.split(key, 8)

  x = jax.random.normal(kx, (N, dim, L), dtype=jnp.float32)
  pconv_w = jax.random.normal(kp, (Cp, Cp, 3), dtype=jnp.float32) * 0.2
  up_w = jax.random.normal(ku, (hidden, dim, 1), dtype=jnp.float32) * 0.2
  down_w = jax.random.normal(kd, (dim, hidden, 1), dtype=jnp.float32) * 0.2
  # BatchNorm1d(hidden) eval-mode parameters / running stats.
  bn_gamma = 1.0 + 0.1 * jax.random.normal(kg, (hidden,), dtype=jnp.float32)
  bn_beta = 0.1 * jax.random.normal(kb, (hidden,), dtype=jnp.float32)
  bn_mean = 0.1 * jax.random.normal(km, (hidden,), dtype=jnp.float32)
  bn_var = jnp.abs(jax.random.normal(kv, (hidden,), dtype=jnp.float32)) + 0.5

  # One-time weight fusion, hoisted out of the per-forward jit.
  w1, b1, wdn = prepare_mlp_block_weights(
      pconv_w, up_w, bn_gamma, bn_beta, bn_mean, bn_var, down_w,
      dim=dim, n_div=n_div)

  fwd = jax.jit(functools.partial(mlp_block_forward, n_div=n_div))
  y = fwd(x, w1, b1, wdn)
  jax.block_until_ready(y)

  y_ref = _reference_forward(x, pconv_w, up_w, bn_gamma, bn_beta, bn_mean,
                             bn_var, down_w, n_div=n_div)
  assert y.shape == (N, dim, L)
  max_err = float(jnp.max(jnp.abs(y - y_ref)))
  # bf16 MXU operands (f32 accumulation) -> tolerance loosened vs f32 reference.
  assert jnp.allclose(y, y_ref, atol=3e-2, rtol=3e-2), max_err

  print("KERNEL_OK")
</pallas_src>

<mosaic_0001>
module attributes {stable_mosaic.version = 11 : i64} {
  func.func @_mlp_block_kernel(%arg0: i32, %arg1: memref<32x128xf32, #tpu.memory_space<vmem>>, %arg2: memref<128x128xbf16, #tpu.memory_space<vmem>>, %arg3: memref<1x128xf32, #tpu.memory_space<vmem>>, %arg4: memref<128x128xbf16, #tpu.memory_space<vmem>>, %arg5: memref<32x128xf32, #tpu.memory_space<vmem>>) attributes {dimension_semantics = [#tpu.dimension_semantics<parallel>], iteration_bounds = array<i64: 1>, scalar_prefetch = 0 : i64, scratch_operands = 0 : i64, tpu.core_type = #tpu.core_type<tc>, window_params = [{transform_indices = @transform_0, window_bounds = array<i64: 32, 128>}, {pipeline_mode = #tpu.pipeline_mode<synchronous>, transform_indices = @transform_1, window_bounds = array<i64: 128, 128>}, {pipeline_mode = #tpu.pipeline_mode<synchronous>, transform_indices = @transform_2, window_bounds = array<i64: 1, 128>}, {pipeline_mode = #tpu.pipeline_mode<synchronous>, transform_indices = @transform_3, window_bounds = array<i64: 128, 128>}, {transform_indices = @transform_4, window_bounds = array<i64: 32, 128>}]} {
    %c0 = arith.constant 0 : index
    %c0_0 = arith.constant 0 : index
    %0 = vector.load %arg1[%c0, %c0_0] : memref<32x128xf32, #tpu.memory_space<vmem>>, vector<32x128xf32>
    %1 = arith.truncf %0 : vector<32x128xf32> to vector<32x128xbf16>
    %c0_1 = arith.constant 0 : index
    %c0_2 = arith.constant 0 : index
    %2 = vector.load %arg2[%c0_1, %c0_2] : memref<128x128xbf16, #tpu.memory_space<vmem>>, vector<128x128xbf16>
    %cst = arith.constant dense<0.000000e+00> : vector<32x128xf32>
    %3 = tpu.matmul %1, %2, %cst {dimension_numbers = #tpu.dot_dimension_numbers<[1], [0], [0], [1], [0, 0, 1, 1], [], []>} : vector<32x128xbf16>, vector<128x128xbf16>, vector<32x128xf32> -> vector<32x128xf32>
    %c0_3 = arith.constant 0 : index
    %c0_4 = arith.constant 0 : index
    %4 = vector.load %arg3[%c0_3, %c0_4] : memref<1x128xf32, #tpu.memory_space<vmem>>, vector<1x128xf32>
    %5 = vector.broadcast %4 : vector<1x128xf32> to vector<32x128xf32>
    %6 = arith.addf %3, %5 : vector<32x128xf32>
    %cst_5 = arith.constant 0.000000e+00 : f32
    %7 = vector.broadcast %cst_5 : f32 to vector<32x128xf32>
    %8 = arith.maximumf %6, %7 : vector<32x128xf32>
    %9 = arith.truncf %8 : vector<32x128xf32> to vector<32x128xbf16>
    %c0_6 = arith.constant 0 : index
    %c0_7 = arith.constant 0 : index
    %10 = vector.load %arg4[%c0_6, %c0_7] : memref<128x128xbf16, #tpu.memory_space<vmem>>, vector<128x128xbf16>
    %cst_8 = arith.constant dense<0.000000e+00> : vector<32x128xf32>
    %11 = tpu.matmul %9, %10, %cst_8 {dimension_numbers = #tpu.dot_dimension_numbers<[1], [0], [0], [1], [0, 0, 1, 1], [], []>} : vector<32x128xbf16>, vector<128x128xbf16>, vector<32x128xf32> -> vector<32x128xf32>
    %12 = arith.addf %0, %11 : vector<32x128xf32>
    %c0_9 = arith.constant 0 : index
    %c0_10 = arith.constant 0 : index
    %13 = vector.load %arg5[%c0_9, %c0_10] : memref<32x128xf32, #tpu.memory_space<vmem>>, vector<32x128xf32>
    tpu.vector_store %arg5[%c0_9, %c0_10], %12 {strides = array<i32>} : memref<32x128xf32, #tpu.memory_space<vmem>>, vector<32x128xf32>,
    return
  }
  func.func @transform_0(%arg0: i32) -> (i32, i32) {
    %c0_i32 = arith.constant 0 : i32
    %c0_i32_0 = arith.constant 0 : i32
    return %arg0, %c0_i32 : i32, i32
  }
  func.func @transform_1(%arg0: i32) -> (i32, i32) {
    %c0_i32 = arith.constant 0 : i32
    %c0_i32_0 = arith.constant 0 : i32
    %c0_i32_1 = arith.constant 0 : i32
    return %c0_i32, %c0_i32_0 : i32, i32
  }
  func.func @transform_2(%arg0: i32) -> (i32, i32) {
    %c0_i32 = arith.constant 0 : i32
    %c0_i32_0 = arith.constant 0 : i32
    %c0_i32_1 = arith.constant 0 : i32
    return %c0_i32, %c0_i32_0 : i32, i32
  }
  func.func @transform_3(%arg0: i32) -> (i32, i32) {
    %c0_i32 = arith.constant 0 : i32
    %c0_i32_0 = arith.constant 0 : i32
    %c0_i32_1 = arith.constant 0 : i32
    return %c0_i32, %c0_i32_0 : i32, i32
  }
  func.func @transform_4(%arg0: i32) -> (i32, i32) {
    %c0_i32 = arith.constant 0 : i32
    %c0_i32_0 = arith.constant 0 : i32
    return %arg0, %c0_i32 : i32, i32
  }
}

</mosaic_0001>

<bundles_post_ra>
// kernel: mlp_block_forward.1
= control target key start
LH: loop header
LB: loop body
LE: loop exit
PB: predicated region body
PF: predicated region fallthrough
CT: control target
= control target key end

     0   :  { %s408_s1 = inlined_call_operand.vmem [shape: bf16[128,128], index: 1, kind: input, shape index: {}]   ;;  %s409_s3 = inlined_call_operand.vmem [shape: bf16[128,128], index: 3, kind: input, shape index: {}]   ;;  %s410_s2 = inlined_call_operand.vmem [shape: f32[1,128], index: 2, kind: input, shape index: {}]   ;;  %s411_s0 = inlined_call_operand.vmem [shape: f32[32,128], index: 0, kind: input, shape index: {}]   ;;  %s412_s4 = inlined_call_operand.vmem [shape: f32[32,128], index: 4, kind: output, shape index: {}]  }
   0x1   :  { %v282_v0 = vld [vmem:[%s408_s1 + $0x38] sm:$0xff]  ;;  %v281_v1 = vld [vmem:[%s408_s1 + $0x30] sm:$0xff]  ;;  %v280_v3 = vld [vmem:[%s408_s1 + $0x28] sm:$0xff] }
   0x2   :  { %91 = vmatpush.bf16.msra.mxu0 %v282_v0  ;;  %291 = vmatpush.bf16.msra.mxu2 %v282_v0  ;;  %v290_v2 = vld [vmem:[%s409_s3 + $0x38] sm:$0xff]  ;;  %v289_v4 = vld [vmem:[%s409_s3 + $0x30] sm:$0xff]  ;;  %v279_v5 = vld [vmem:[%s408_s1 + $0x20] sm:$0xff] }
   0x3   :  { %180 = vmatpush.bf16.msra.mxu1 %v290_v2  ;;  %299 = vmatpush.bf16.msra.mxu3 %v290_v2  ;;  %v288_v6 = vld [vmem:[%s409_s3 + $0x28] sm:$0xff]  ;;  %v278_v7 = vld [vmem:[%s408_s1 + $0x18] sm:$0xff]  ;;  %v287_v8 = vld [vmem:[%s409_s3 + $0x20] sm:$0xff] }
   0x4   :  { %v277_v9 = vld [vmem:[%s408_s1 + $0x10] sm:$0xff]  ;;  %v276_v10 = vld [vmem:[%s408_s1 + $0x8] sm:$0xff]  ;;  %v275_v11 = vld [vmem:[%s408_s1] sm:$0xff] }
   0x5   :  { %v17_v12 = vld [vmem:[%s411_s0] sm:$0xff]  ;;  %v18_v13 = vld [vmem:[%s411_s0 + $0x8] sm:$0xff]  ;;  %v19_v14 = vld [vmem:[%s411_s0 + $0x10] sm:$0xff] }
   0x6   :  { %92 = vmatpush.bf16.msra.mxu0 %v281_v1  ;;  %292 = vmatpush.bf16.msra.mxu2 %v281_v1  ;;  %v20_v15 = vld [vmem:[%s411_s0 + $0x18] sm:$0xff]  ;;  %v21_v16 = vpack.c.bf16 %v18_v13, %v17_v12  ;;  %v285_v19 = vld [vmem:[%s409_s3 + $0x10] sm:$0xff]  ;;  %v284_v20 = vld [vmem:[%s409_s3 + $0x8] sm:$0xff] }
   0x7   :  { %181 = vmatpush.bf16.msra.mxu1 %v289_v4  ;;  %300 = vmatpush.bf16.msra.mxu3 %v289_v4  ;;  %v22_v17 = vpack.c.bf16 %v20_v15, %v19_v14  ;;  %v286_v18 = vld [vmem:[%s409_s3 + $0x18] sm:$0xff]  ;;  %v283_v21 = vld [vmem:[%s409_s3] sm:$0xff] }
   0x8   :  { %v307_v23 = vld [vmem:[%s410_s2] ss:$0 sm:$0xff] }
   0xa   :  { %93 = vmatpush.bf16.msra.mxu0 %v280_v3  ;;  %293 = vmatpush.bf16.msra.mxu2 %v280_v3 }
   0xb   :  { %182 = vmatpush.bf16.msra.mxu1 %v288_v6  ;;  %301 = vmatpush.bf16.msra.mxu3 %v288_v6 }
   0xe   :  { %94 = vmatpush.bf16.msra.mxu0 %v279_v5  ;;  %294 = vmatpush.bf16.msra.mxu2 %v279_v5 }
   0xf   :  { %183 = vmatpush.bf16.msra.mxu1 %v287_v8  ;;  %302 = vmatpush.bf16.msra.mxu3 %v287_v8 }
  0x12   :  { %95 = vmatpush.bf16.msra.mxu0 %v278_v7  ;;  %295 = vmatpush.bf16.msra.mxu2 %v278_v7 }
  0x13   :  { %184 = vmatpush.bf16.msra.mxu1 %v286_v18  ;;  %303 = vmatpush.bf16.msra.mxu3 %v286_v18 }
  0x16   :  { %96 = vmatpush.bf16.msra.mxu0 %v277_v9  ;;  %296 = vmatpush.bf16.msra.mxu2 %v277_v9 }
  0x17   :  { %185 = vmatpush.bf16.msra.mxu1 %v285_v19  ;;  %304 = vmatpush.bf16.msra.mxu3 %v285_v19 }
  0x1a   :  { %97 = vmatpush.bf16.msra.mxu0 %v276_v10  ;;  %297 = vmatpush.bf16.msra.mxu2 %v276_v10 }
  0x1b   :  { %186 = vmatpush.bf16.msra.mxu1 %v284_v20  ;;  %305 = vmatpush.bf16.msra.mxu3 %v284_v20 }
  0x1e   :  { %98 = vmatpush.bf16.msra.mxu0 %v275_v11  ;;  %298 = vmatpush.bf16.msra.mxu2 %v275_v11 }
  0x1f   :  { %187 = vmatpush.bf16.msra.mxu1 %v283_v21  ;;  %306 = vmatpush.bf16.msra.mxu3 %v283_v21 }
  0x21   :  { %99 = vmatmul.bf16.vlgmr.msra.gmra.mxu0 %v21_v16  ;;  %104 = vmatmul.bf16.vlgmr.msra.gmra.mxu2 %v22_v17 }
  0x9e   :  { %v100_v22 = vpop.f32.mrf.mxu0 }
  0x9f   :  { %v101_v24 = vadd.f32 %v307_v23, %v100_v22 }
  0xa1   :  { %v110_v27 = vmax.f32 %v101_v24, 0.0 }
  0xa4   :  { %v105_v25 = vpop.f32.mrf.mxu2 }
  0xa5   :  { %v106_v30 = vadd.f32 %v307_v23, %v105_v25 }
  0xa6   :  { %v102_v26 = vpop.f32.mrf.mxu0 }
  0xa7   :  { %v103_v28 = vadd.f32 %v307_v23, %v102_v26  ;;  %v112_v34 = vmax.f32 %v106_v30, 0.0 }
  0xa9   :  { %v111_v29 = vmax.f32 %v103_v28, 0.0 }
  0xab   :  { %v114_v31 = vpack.c.bf16 %v111_v29, %v110_v27 }
  0xac   :  { %v107_v32 = vpop.f32.mrf.mxu2 }
  0xad   :  { %v108_v33 = vadd.f32 %v307_v23, %v107_v32  ;;  %188 = vmatmul.bf16.vlgmr.msra.gmra.mxu1 %v114_v31 }
  0xaf   :  { %v113_v35 = vmax.f32 %v108_v33, 0.0 }
  0xb1   :  { %v115_v36 = vpack.c.bf16 %v113_v35, %v112_v34 }
  0xb3   :  { %193 = vmatmul.bf16.vlgmr.msra.gmra.mxu3 %v115_v36 }
 0x12a   :  { %v189_v37 = vpop.f32.mrf.mxu1 }
 0x12b   :  { %v199_v38 = vadd.f32 %v189_v37, %v17_v12 }
 0x12d   :  { %203 = vst [vmem:[%s412_s4] sm:$0xff] %v199_v38 }
 0x132   :  { %v191_v39 = vpop.f32.mrf.mxu1 }
 0x133   :  { %v200_v40 = vadd.f32 %v191_v39, %v18_v13 }
 0x135   :  { %204 = vst [vmem:[%s412_s4 + $0x8] sm:$0xff] %v200_v40 }
 0x136   :  { %v194_v41 = vpop.f32.mrf.mxu3 }
 0x137   :  { %v201_v42 = vadd.f32 %v194_v41, %v19_v14 }
 0x139   :  { %205 = vst [vmem:[%s412_s4 + $0x10] sm:$0xff] %v201_v42 }
 0x13e   :  { %v196_v43 = vpop.f32.mrf.mxu3 }
 0x13f   :  { %v202_v44 = vadd.f32 %v196_v43, %v20_v15 }
 0x141   :  { %206 = vst [vmem:[%s412_s4 + $0x18] sm:$0xff] %v202_v44 }

</bundles_post_ra>
